<compile_context>
chip_gen: v7x
topology: tpu7x:2x2x1
jax: 0.10.0
libtpu: 0.0.40
codegen_flags: <defaults>
</compile_context>

<pallas_src>
import functools

import jax
import jax.numpy as jnp
from jax.experimental import pallas as pl
from jax.experimental.pallas import tpu as pltpu


def _conv3x3_relu_kernel(x_ref, w_ref, b_ref, o_ref, *, H, W, Cin, Cout, Nb):
    """One grid step = `Nb` images.

    x_ref : (Nb, Cin, H*W)   NCHW images, spatial flattened on the lane axis
    w_ref : (9, Cout, Cin)   per-tap weights, tap index t = kh*3 + kw
    b_ref : (Cout, 1)        bias (f32)
    o_ref : (Nb, Cout, H*W)  output, spatial flattened on the lane axis
    """
    HW = H * W

    # Tap-validity masks, hoisted once per grid step and materialized directly
    # at the slab shape (Cin, HW) so no broadcast_in_dim is re-emitted per tap
    # (JAX does not CSE broadcasts).
    pos = jax.lax.broadcasted_iota(jnp.int32, (Cin, HW), 1)
    col = pos % W
    not_top = pos >= W             # rows r >= 1    (taps with dh == -1)
    not_bottom = pos < (HW - W)    # rows r <= H-2  (taps with dh == +1)
    not_left = col >= 1            # cols c >= 1    (taps with dw == -1)
    not_right = col < (W - 1)      # cols c <= W-2  (taps with dw == +1)

    bias = jnp.broadcast_to(b_ref[...].astype(jnp.float32), (Cout, HW))

    @pl.loop(0, Nb, unroll=Nb <= 4)
    def _(b):
        x_img = x_ref[b]                               # (Cin, HW)
        zero = jnp.zeros((), x_img.dtype)
        acc = jnp.zeros((Cout, HW), jnp.float32)
        for kh in range(3):
            for kw in range(3):
                dh, dw = kh - 1, kw - 1
                s = dh * W + dw                        # flat tap offset
                # slab[p] == x_img[p + s]; the lane wrap only reaches
                # positions that the masks below force to zero, reproducing
                # SAME zero padding exactly.
                if s == 0:
                    slab = x_img
                else:
                    slab = pltpu.roll(x_img, shift=(-s) % HW, axis=1)
                mask = None
                if dh == -1:
                    mask = not_top
                elif dh == 1:
                    mask = not_bottom
                if dw == -1:
                    mask = not_left if mask is None else (mask & not_left)
                elif dw == 1:
                    mask = not_right if mask is None else (mask & not_right)
                if mask is not None:
                    slab = jnp.where(mask, slab, zero)
                # MXU note: M = Cout and K = Cin are tiny here (<1% MXU
                # utilization on v6e/v7x's 256x256 array).  Acceptable only
                # because the kernel is HBM/vst-bound at these channel counts.
                # TODO(synk): tile Cout on a grid axis / pad K if Handle ever
                # wraps wide conv layers instead of assuming MXU headroom.
                acc = acc + jnp.dot(w_ref[kh * 3 + kw], slab,
                                    preferred_element_type=jnp.float32)
        y = jnp.maximum(acc + bias, 0.0)               # bias + ReLU in f32
        o_ref[b] = y.astype(o_ref.dtype)


def _pick_block_batch(n, per_image_live_bytes, budget_bytes=12 << 20,
                      max_block=64):
    """Largest batch block (divisor of n, <= max_block) whose DOUBLE-BUFFERED
    in+out blocks fit the VMEM budget, preferring a grid extent >= 2 so v7x's
    two TensorCores both get work on the "parallel" batch axis.  There is no
    scratch term any more (the kernel has no im2col / padded-view buffers)."""
    divisors = [d for d in range(1, n + 1) if n % d == 0]
    fitting = [d for d in divisors
               if d <= max_block and d * per_image_live_bytes <= budget_bytes]
    if not fitting:
        # TODO(synk): for very large images even one image per step exceeds
        # the budget -- add an H row-band grid axis with a 1-row halo.
        return 1
    multi_step = [d for d in fitting if n // d >= 2]
    return max(multi_step) if multi_step else max(fitting)


def baseline_conv_relu(x_nchw, weight, bias, *, block_batch=None,
                       compute_dtype=None, out_dtype=None):
    """x_nchw: (N, Cin, H, W); weight: (Cout, Cin, 3, 3); bias: (Cout,)."""
    N, Cin, H, W = x_nchw.shape
    Cout = weight.shape[0]
    HW = H * W

    in_dtype = (jnp.dtype(compute_dtype) if compute_dtype is not None
                else jnp.dtype(x_nchw.dtype))
    # bf16 compute extends to the output stream (the dominant HBM stream on
    # v6e/v7x); accumulation / bias / ReLU stay f32 inside the kernel.
    out_dtype = jnp.dtype(out_dtype) if out_dtype is not None else in_dtype

    # Free reshapes only -- no transpose, no jnp.pad HBM round trips.
    x_flat = x_nchw.reshape(N, Cin, HW).astype(in_dtype)
    # (Cout, Cin, 3, 3) -> (kh, kw, Cout, Cin) -> (9, Cout, Cin): tap-major,
    # matching the tap order in the kernel (tiny array).
    w_taps = jnp.transpose(weight, (2, 3, 0, 1)).reshape(9, Cout, Cin)
    w_taps = w_taps.astype(in_dtype)
    b_col = bias.astype(jnp.float32).reshape(Cout, 1)

    in_item = jnp.dtype(in_dtype).itemsize
    out_item = jnp.dtype(out_dtype).itemsize
    # Double-buffered input + output blocks per image (no scratch buffers).
    per_image_live = 2 * HW * (Cin * in_item + Cout * out_item)
    if block_batch is None:
        block_batch = _pick_block_batch(N, per_image_live)
    nb = block_batch
    assert N % nb == 0
    grid = (N // nb,)

    # TODO(synk): for large images, add an H row-band grid axis (1-row halo)
    # so blocks stay inside v7x's 64 MiB VMEM and a batch of 1 still yields
    # >= 2 parallel grid units for the two TensorCores.

    live_bytes = nb * per_image_live + w_taps.size * in_item + b_col.size * 4
    vmem_limit = int(min(max(live_bytes + (8 << 20), 32 << 20), 64 << 20))

    kernel = functools.partial(_conv3x3_relu_kernel, H=H, W=W, Cin=Cin,
                               Cout=Cout, Nb=nb)

    flops = 2 * N * HW * 9 * Cin * Cout
    bytes_accessed = (x_flat.size * in_item + w_taps.size * in_item
                      + b_col.size * 4 + N * Cout * HW * out_item)

    out_flat = pl.pallas_call(
        kernel,
        out_shape=jax.ShapeDtypeStruct((N, Cout, HW), out_dtype),
        grid=grid,
        in_specs=[
            pl.BlockSpec((nb, Cin, HW), lambda i: (i, 0, 0)),
            pl.BlockSpec((9, Cout, Cin), lambda i: (0, 0, 0)),
            pl.BlockSpec((Cout, 1), lambda i: (0, 0)),
        ],
        out_specs=pl.BlockSpec((nb, Cout, HW), lambda i: (i, 0, 0)),
        compiler_params=pltpu.CompilerParams(
            dimension_semantics=("parallel",),
            vmem_limit_bytes=vmem_limit),
        cost_estimate=pl.CostEstimate(flops=flops, transcendentals=0,
                                      bytes_accessed=bytes_accessed),
    )(x_flat, w_taps, b_col)

    # (N, Cout, H*W) -> (N, Cout, H, W): free reshape, already NCHW order.
    return out_flat.reshape(N, Cout, H, W)


class Handle:
    """JAX/Pallas port of the PyTorch Handle wrapper."""

    def __init__(self, model, device):
        self.model = model
        self.device = device  # device placement is a no-op under JAX

    def __call__(self, input_tensor):
        return self.forward(input_tensor)

    def forward(self, input_tensor):
        # Validation kept identical to the original module (including its
        # redundant `< 4 or < 3` check); short-circuit protects shape[2:4].
        ndim = input_tensor.ndim
        if (ndim < 4 or ndim < 3 or input_tensor.shape[2] < 32
                or input_tensor.shape[3] < 32):
            raise ValueError(
                "Please keep the following in mind while initializing the "
                "model:\n * Input tensor must be 4D or 3D and must have at "
                "least one channel and one time step!\n * Input tensor's "
                "height and width must be at least 32!\n")
        return self.model(input_tensor)


if __name__ == "__main__":
    key = jax.random.PRNGKey(0)
    k_x, k_w, k_b = jax.random.split(key, 3)

    # Small shapes consistent with Handle's validation (H, W >= 32).
    N, Cin, H, W, Cout = 2, 4, 32, 32, 8
    x = jax.random.normal(k_x, (N, Cin, H, W), dtype=jnp.float32)

    # Deterministic parameter init (Conv2d(Cin, Cout, 3, padding=1)).
    fan_in = Cin * 3 * 3
    bound = 1.0 / (fan_in ** 0.5)
    weight = jax.random.uniform(k_w, (Cout, Cin, 3, 3), jnp.float32,
                                -bound, bound)
    bias = jax.random.uniform(k_b, (Cout,), jnp.float32, -bound, bound)

    model = lambda t: baseline_conv_relu(t, weight, bias)
    handle = Handle(model, device="tpu")

    out = jax.block_until_ready(handle(x))

    # Cross-check against a plain-JAX reference of the same baseline model.
    ref = jax.lax.conv_general_dilated(
        x, weight, window_strides=(1, 1), padding="SAME",
        dimension_numbers=("NCHW", "OIHW", "NCHW"))
    ref = jnp.maximum(ref + bias[None, :, None, None], 0.0)
    assert out.shape == (N, Cout, H, W)
    assert jnp.allclose(out, ref, atol=1e-4, rtol=1e-4)

    # bf16 compute + bf16 output path (halves both HBM streams on v6e/v7x,
    # f32 accumulation inside the kernel); sanity-run only, numerics are
    # intentionally lower precision.
    out_bf16 = jax.block_until_ready(
        baseline_conv_relu(x, weight, bias, compute_dtype=jnp.bfloat16))
    assert out_bf16.shape == (N, Cout, H, W)
    assert out_bf16.dtype == jnp.bfloat16
    assert bool(jnp.isfinite(out_bf16.astype(jnp.float32)).all())

    print("KERNEL_OK")
</pallas_src>

<mosaic_0001>
module attributes {stable_mosaic.version = 11 : i64} {
  func.func @_conv3x3_relu_kernel(%arg0: i32, %arg1: memref<1x4x1024xf32, #tpu.memory_space<vmem>>, %arg2: memref<9x8x4xf32, #tpu.memory_space<vmem>>, %arg3: memref<8x1xf32, #tpu.memory_space<vmem>>, %arg4: memref<1x8x1024xf32, #tpu.memory_space<vmem>>) attributes {dimension_semantics = [#tpu.dimension_semantics<parallel>], iteration_bounds = array<i64: 2>, scalar_prefetch = 0 : i64, scratch_operands = 0 : i64, tpu.core_type = #tpu.core_type<tc>, window_params = [{transform_indices = @transform_0, window_bounds = array<i64: 1, 4, 1024>}, {pipeline_mode = #tpu.pipeline_mode<synchronous>, transform_indices = @transform_1, window_bounds = array<i64: 9, 8, 4>}, {pipeline_mode = #tpu.pipeline_mode<synchronous>, transform_indices = @transform_2, window_bounds = array<i64: 8, 1>}, {transform_indices = @transform_3, window_bounds = array<i64: 1, 8, 1024>}]} {
    %0 = tpu.iota {dimensions = array<i32: 1>} : vector<4x1024xi32>
    %c32_i32 = arith.constant 32 : i32
    %c0_i32 = arith.constant 0 : i32
    %1 = arith.cmpi eq, %c32_i32, %c0_i32 : i32
    %c1_i32 = arith.constant 1 : i32
    %2 = arith.select %1, %c1_i32, %c32_i32 : i32
    %3 = vector.broadcast %2 : i32 to vector<4x1024xi32>
    %4 = arith.remsi %0, %3 : vector<4x1024xi32>
    %c0_i32_0 = arith.constant 0 : i32
    %5 = vector.broadcast %c0_i32_0 : i32 to vector<4x1024xi32>
    %6 = arith.cmpi ne, %4, %5 : vector<4x1024xi32>
    %c0_i32_1 = arith.constant 0 : i32
    %7 = vector.broadcast %c0_i32_1 : i32 to vector<4x1024xi32>
    %8 = arith.cmpi slt, %4, %7 : vector<4x1024xi32>
    %c0_i32_2 = arith.constant 0 : i32
    %9 = arith.cmpi slt, %2, %c0_i32_2 : i32
    %10 = vector.broadcast %9 : i1 to vector<4x1024xi1>
    %11 = vector.broadcast %10 : vector<4x1024xi1> to vector<4x1024xi1>
    %12 = arith.xori %8, %11 : vector<4x1024xi1>
    %13 = arith.andi %12, %6 : vector<4x1024xi1>
    %14 = vector.broadcast %2 : i32 to vector<4x1024xi32>
    %15 = arith.addi %4, %14 : vector<4x1024xi32>
    %16 = arith.select %13, %15, %4 : vector<4x1024xi1>, vector<4x1024xi32>
    %c32_i32_3 = arith.constant 32 : i32
    %17 = vector.broadcast %c32_i32_3 : i32 to vector<4x1024xi32>
    %18 = arith.cmpi sge, %0, %17 : vector<4x1024xi32>
    %c992_i32 = arith.constant 992 : i32
    %19 = vector.broadcast %c992_i32 : i32 to vector<4x1024xi32>
    %20 = arith.cmpi slt, %0, %19 : vector<4x1024xi32>
    %c1_i32_4 = arith.constant 1 : i32
    %21 = vector.broadcast %c1_i32_4 : i32 to vector<4x1024xi32>
    %22 = arith.cmpi sge, %16, %21 : vector<4x1024xi32>
    %c31_i32 = arith.constant 31 : i32
    %23 = vector.broadcast %c31_i32 : i32 to vector<4x1024xi32>
    %24 = arith.cmpi slt, %16, %23 : vector<4x1024xi32>
    %c0 = arith.constant 0 : index
    %c0_5 = arith.constant 0 : index
    %25 = vector.load %arg3[%c0, %c0_5] : memref<8x1xf32, #tpu.memory_space<vmem>>, vector<8x1xf32>
    %26 = vector.shape_cast %25 : vector<8x1xf32> to vector<8x1xf32>
    %27 = vector.broadcast %26 : vector<8x1xf32> to vector<8x1024xf32>
    %c0_i32_6 = arith.constant 0 : i32
    %c1_i32_7 = arith.constant 1 : i32
    %28 = arith.muli %c0_i32_6, %c1_i32_7 : i32
    %c0_i32_8 = arith.constant 0 : i32
    %29 = arith.addi %c0_i32_8, %28 : i32
    %30 = arith.index_cast %29 : i32 to index
    %c0_9 = arith.constant 0 : index
    %c0_10 = arith.constant 0 : index
    %31 = vector.load %arg1[%30, %c0_9, %c0_10] : memref<1x4x1024xf32, #tpu.memory_space<vmem>>, vector<1x4x1024xf32>
    %32 = vector.shape_cast %31 : vector<1x4x1024xf32> to vector<4x1024xf32>
    %cst = arith.constant 0.000000e+00 : f32
    %33 = vector.broadcast %cst : f32 to vector<8x1024xf32>
    %c33_i32 = arith.constant 33 : i32
    %34 = tpu.dynamic_rotate %32 by %c33_i32 dim 1 : vector<4x1024xf32>, i32 -> vector<4x1024xf32>
    %35 = arith.andi %18, %22 : vector<4x1024xi1>
    %cst_11 = arith.constant 0.000000e+00 : f32
    %36 = vector.broadcast %cst_11 : f32 to vector<4x1024xf32>
    %37 = arith.select %35, %34, %36 : vector<4x1024xi1>, vector<4x1024xf32>
    %c0_12 = arith.constant 0 : index
    %c0_13 = arith.constant 0 : index
    %c0_14 = arith.constant 0 : index
    %38 = vector.load %arg2[%c0_12, %c0_13, %c0_14] : memref<9x8x4xf32, #tpu.memory_space<vmem>>, vector<1x8x4xf32>
    %39 = vector.shape_cast %38 : vector<1x8x4xf32> to vector<8x4xf32>
    %cst_15 = arith.constant dense<0.000000e+00> : vector<8x1024xf32>
    %40 = tpu.matmul %39, %37, %cst_15 {dimension_numbers = #tpu.dot_dimension_numbers<[1], [0], [0], [1], [0, 0, 1, 1], [], []>} : vector<8x4xf32>, vector<4x1024xf32>, vector<8x1024xf32> -> vector<8x1024xf32>
    %41 = arith.addf %33, %40 : vector<8x1024xf32>
    %c32_i32_16 = arith.constant 32 : i32
    %42 = tpu.dynamic_rotate %32 by %c32_i32_16 dim 1 : vector<4x1024xf32>, i32 -> vector<4x1024xf32>
    %cst_17 = arith.constant 0.000000e+00 : f32
    %43 = vector.broadcast %cst_17 : f32 to vector<4x1024xf32>
    %44 = arith.select %18, %42, %43 : vector<4x1024xi1>, vector<4x1024xf32>
    %c1 = arith.constant 1 : index
    %c0_18 = arith.constant 0 : index
    %c0_19 = arith.constant 0 : index
    %45 = vector.load %arg2[%c1, %c0_18, %c0_19] : memref<9x8x4xf32, #tpu.memory_space<vmem>>, vector<1x8x4xf32>
    %46 = vector.shape_cast %45 : vector<1x8x4xf32> to vector<8x4xf32>
    %cst_20 = arith.constant dense<0.000000e+00> : vector<8x1024xf32>
    %47 = tpu.matmul %46, %44, %cst_20 {dimension_numbers = #tpu.dot_dimension_numbers<[1], [0], [0], [1], [0, 0, 1, 1], [], []>} : vector<8x4xf32>, vector<4x1024xf32>, vector<8x1024xf32> -> vector<8x1024xf32>
    %48 = arith.addf %41, %47 : vector<8x1024xf32>
    %c31_i32_21 = arith.constant 31 : i32
    %49 = tpu.dynamic_rotate %32 by %c31_i32_21 dim 1 : vector<4x1024xf32>, i32 -> vector<4x1024xf32>
    %50 = arith.andi %18, %24 : vector<4x1024xi1>
    %cst_22 = arith.constant 0.000000e+00 : f32
    %51 = vector.broadcast %cst_22 : f32 to vector<4x1024xf32>
    %52 = arith.select %50, %49, %51 : vector<4x1024xi1>, vector<4x1024xf32>
    %c2 = arith.constant 2 : index
    %c0_23 = arith.constant 0 : index
    %c0_24 = arith.constant 0 : index
    %53 = vector.load %arg2[%c2, %c0_23, %c0_24] : memref<9x8x4xf32, #tpu.memory_space<vmem>>, vector<1x8x4xf32>
    %54 = vector.shape_cast %53 : vector<1x8x4xf32> to vector<8x4xf32>
    %cst_25 = arith.constant dense<0.000000e+00> : vector<8x1024xf32>
    %55 = tpu.matmul %54, %52, %cst_25 {dimension_numbers = #tpu.dot_dimension_numbers<[1], [0], [0], [1], [0, 0, 1, 1], [], []>} : vector<8x4xf32>, vector<4x1024xf32>, vector<8x1024xf32> -> vector<8x1024xf32>
    %56 = arith.addf %48, %55 : vector<8x1024xf32>
    %c1_i32_26 = arith.constant 1 : i32
    %57 = tpu.dynamic_rotate %32 by %c1_i32_26 dim 1 : vector<4x1024xf32>, i32 -> vector<4x1024xf32>
    %cst_27 = arith.constant 0.000000e+00 : f32
    %58 = vector.broadcast %cst_27 : f32 to vector<4x1024xf32>
    %59 = arith.select %22, %57, %58 : vector<4x1024xi1>, vector<4x1024xf32>
    %c3 = arith.constant 3 : index
    %c0_28 = arith.constant 0 : index
    %c0_29 = arith.constant 0 : index
    %60 = vector.load %arg2[%c3, %c0_28, %c0_29] : memref<9x8x4xf32, #tpu.memory_space<vmem>>, vector<1x8x4xf32>
    %61 = vector.shape_cast %60 : vector<1x8x4xf32> to vector<8x4xf32>
    %cst_30 = arith.constant dense<0.000000e+00> : vector<8x1024xf32>
    %62 = tpu.matmul %61, %59, %cst_30 {dimension_numbers = #tpu.dot_dimension_numbers<[1], [0], [0], [1], [0, 0, 1, 1], [], []>} : vector<8x4xf32>, vector<4x1024xf32>, vector<8x1024xf32> -> vector<8x1024xf32>
    %63 = arith.addf %56, %62 : vector<8x1024xf32>
    %c4 = arith.constant 4 : index
    %c0_31 = arith.constant 0 : index
    %c0_32 = arith.constant 0 : index
    %64 = vector.load %arg2[%c4, %c0_31, %c0_32] : memref<9x8x4xf32, #tpu.memory_space<vmem>>, vector<1x8x4xf32>
    %65 = vector.shape_cast %64 : vector<1x8x4xf32> to vector<8x4xf32>
    %cst_33 = arith.constant dense<0.000000e+00> : vector<8x1024xf32>
    %66 = tpu.matmul %65, %32, %cst_33 {dimension_numbers = #tpu.dot_dimension_numbers<[1], [0], [0], [1], [0, 0, 1, 1], [], []>} : vector<8x4xf32>, vector<4x1024xf32>, vector<8x1024xf32> -> vector<8x1024xf32>
    %67 = arith.addf %63, %66 : vector<8x1024xf32>
    %c1023_i32 = arith.constant 1023 : i32
    %68 = tpu.dynamic_rotate %32 by %c1023_i32 dim 1 : vector<4x1024xf32>, i32 -> vector<4x1024xf32>
    %cst_34 = arith.constant 0.000000e+00 : f32
    %69 = vector.broadcast %cst_34 : f32 to vector<4x1024xf32>
    %70 = arith.select %24, %68, %69 : vector<4x1024xi1>, vector<4x1024xf32>
    %c5 = arith.constant 5 : index
    %c0_35 = arith.constant 0 : index
    %c0_36 = arith.constant 0 : index
    %71 = vector.load %arg2[%c5, %c0_35, %c0_36] : memref<9x8x4xf32, #tpu.memory_space<vmem>>, vector<1x8x4xf32>
    %72 = vector.shape_cast %71 : vector<1x8x4xf32> to vector<8x4xf32>
    %cst_37 = arith.constant dense<0.000000e+00> : vector<8x1024xf32>
    %73 = tpu.matmul %72, %70, %cst_37 {dimension_numbers = #tpu.dot_dimension_numbers<[1], [0], [0], [1], [0, 0, 1, 1], [], []>} : vector<8x4xf32>, vector<4x1024xf32>, vector<8x1024xf32> -> vector<8x1024xf32>
    %74 = arith.addf %67, %73 : vector<8x1024xf32>
    %c993_i32 = arith.constant 993 : i32
    %75 = tpu.dynamic_rotate %32 by %c993_i32 dim 1 : vector<4x1024xf32>, i32 -> vector<4x1024xf32>
    %76 = arith.andi %20, %22 : vector<4x1024xi1>
    %cst_38 = arith.constant 0.000000e+00 : f32
    %77 = vector.broadcast %cst_38 : f32 to vector<4x1024xf32>
    %78 = arith.select %76, %75, %77 : vector<4x1024xi1>, vector<4x1024xf32>
    %c6 = arith.constant 6 : index
    %c0_39 = arith.constant 0 : index
    %c0_40 = arith.constant 0 : index
    %79 = vector.load %arg2[%c6, %c0_39, %c0_40] : memref<9x8x4xf32, #tpu.memory_space<vmem>>, vector<1x8x4xf32>
    %80 = vector.shape_cast %79 : vector<1x8x4xf32> to vector<8x4xf32>
    %cst_41 = arith.constant dense<0.000000e+00> : vector<8x1024xf32>
    %81 = tpu.matmul %80, %78, %cst_41 {dimension_numbers = #tpu.dot_dimension_numbers<[1], [0], [0], [1], [0, 0, 1, 1], [], []>} : vector<8x4xf32>, vector<4x1024xf32>, vector<8x1024xf32> -> vector<8x1024xf32>
    %82 = arith.addf %74, %81 : vector<8x1024xf32>
    %c992_i32_42 = arith.constant 992 : i32
    %83 = tpu.dynamic_rotate %32 by %c992_i32_42 dim 1 : vector<4x1024xf32>, i32 -> vector<4x1024xf32>
    %cst_43 = arith.constant 0.000000e+00 : f32
    %84 = vector.broadcast %cst_43 : f32 to vector<4x1024xf32>
    %85 = arith.select %20, %83, %84 : vector<4x1024xi1>, vector<4x1024xf32>
    %c7 = arith.constant 7 : index
    %c0_44 = arith.constant 0 : index
    %c0_45 = arith.constant 0 : index
    %86 = vector.load %arg2[%c7, %c0_44, %c0_45] : memref<9x8x4xf32, #tpu.memory_space<vmem>>, vector<1x8x4xf32>
    %87 = vector.shape_cast %86 : vector<1x8x4xf32> to vector<8x4xf32>
    %cst_46 = arith.constant dense<0.000000e+00> : vector<8x1024xf32>
    %88 = tpu.matmul %87, %85, %cst_46 {dimension_numbers = #tpu.dot_dimension_numbers<[1], [0], [0], [1], [0, 0, 1, 1], [], []>} : vector<8x4xf32>, vector<4x1024xf32>, vector<8x1024xf32> -> vector<8x1024xf32>
    %89 = arith.addf %82, %88 : vector<8x1024xf32>
    %c991_i32 = arith.constant 991 : i32
    %90 = tpu.dynamic_rotate %32 by %c991_i32 dim 1 : vector<4x1024xf32>, i32 -> vector<4x1024xf32>
    %91 = arith.andi %20, %24 : vector<4x1024xi1>
    %cst_47 = arith.constant 0.000000e+00 : f32
    %92 = vector.broadcast %cst_47 : f32 to vector<4x1024xf32>
    %93 = arith.select %91, %90, %92 : vector<4x1024xi1>, vector<4x1024xf32>
    %c8 = arith.constant 8 : index
    %c0_48 = arith.constant 0 : index
    %c0_49 = arith.constant 0 : index
    %94 = vector.load %arg2[%c8, %c0_48, %c0_49] : memref<9x8x4xf32, #tpu.memory_space<vmem>>, vector<1x8x4xf32>
    %95 = vector.shape_cast %94 : vector<1x8x4xf32> to vector<8x4xf32>
    %cst_50 = arith.constant dense<0.000000e+00> : vector<8x1024xf32>
    %96 = tpu.matmul %95, %93, %cst_50 {dimension_numbers = #tpu.dot_dimension_numbers<[1], [0], [0], [1], [0, 0, 1, 1], [], []>} : vector<8x4xf32>, vector<4x1024xf32>, vector<8x1024xf32> -> vector<8x1024xf32>
    %97 = arith.addf %89, %96 : vector<8x1024xf32>
    %98 = arith.addf %97, %27 : vector<8x1024xf32>
    %cst_51 = arith.constant 0.000000e+00 : f32
    %99 = vector.broadcast %cst_51 : f32 to vector<8x1024xf32>
    %100 = arith.maximumf %98, %99 : vector<8x1024xf32>
    %101 = arith.index_cast %29 : i32 to index
    %c0_52 = arith.constant 0 : index
    %c0_53 = arith.constant 0 : index
    %102 = vector.load %arg4[%101, %c0_52, %c0_53] : memref<1x8x1024xf32, #tpu.memory_space<vmem>>, vector<1x8x1024xf32>
    %103 = vector.shape_cast %102 : vector<1x8x1024xf32> to vector<8x1024xf32>
    %104 = vector.shape_cast %100 : vector<8x1024xf32> to vector<1x8x1024xf32>
    tpu.vector_store %arg4[%101, %c0_52, %c0_53], %104 {strides = array<i32>} : memref<1x8x1024xf32, #tpu.memory_space<vmem>>, vector<1x8x1024xf32>,
    %c1_i32_54 = arith.constant 1 : i32
    return
  }
  func.func @transform_0(%arg0: i32) -> (i32, i32, i32) {
    %c0_i32 = arith.constant 0 : i32
    %c0_i32_0 = arith.constant 0 : i32
    %c0_i32_1 = arith.constant 0 : i32
    return %arg0, %c0_i32, %c0_i32_0 : i32, i32, i32
  }
  func.func @transform_1(%arg0: i32) -> (i32, i32, i32) {
    %c0_i32 = arith.constant 0 : i32
    %c0_i32_0 = arith.constant 0 : i32
    %c0_i32_1 = arith.constant 0 : i32
    %c0_i32_2 = arith.constant 0 : i32
    return %c0_i32, %c0_i32_0, %c0_i32_1 : i32, i32, i32
  }
  func.func @transform_2(%arg0: i32) -> (i32, i32) {
    %c0_i32 = arith.constant 0 : i32
    %c0_i32_0 = arith.constant 0 : i32
    %c0_i32_1 = arith.constant 0 : i32
    return %c0_i32, %c0_i32_0 : i32, i32
  }
  func.func @transform_3(%arg0: i32) -> (i32, i32, i32) {
    %c0_i32 = arith.constant 0 : i32
    %c0_i32_0 = arith.constant 0 : i32
    %c0_i32_1 = arith.constant 0 : i32
    return %arg0, %c0_i32, %c0_i32_0 : i32, i32, i32
  }
}

</mosaic_0001>

<bundles_post_ra>
// kernel: tpu_custom_call.1
= control target key start
LH: loop header
LB: loop body
LE: loop exit
PB: predicated region body
PF: predicated region fallthrough
CT: control target
= control target key end

     0   :  { %8 = vsyncpa [#allocation3], 0  ;;  %s4672_s0 = inlined_call_operand.vmem [shape: f32[2,4,1024], index: 0, kind: input, shape index: {}]   ;;  %s4673_s1 = inlined_call_operand.vmem [shape: f32[9,8,4], index: 1, kind: input, shape index: {}]   ;;  %s4674_s2 = inlined_call_operand.vmem [shape: f32[8,1], index: 2, kind: input, shape index: {}]   ;;  %s4675_s3 = inlined_call_operand.hbm [shape: f32[2,8,1024], index: 3, kind: output, shape index: {}]  }
   0x1   :  { %10 = vsyncpa [#allocation3 + $0x1], 0  ;;  %s3931_s12 = smov 0   ;;  %s3933_s13 = smov 0  }
   0x2   :  { %s3935_s14 = smov 0   ;;  %s3937_s15 = smov 0  }
   0x3 LB: > { %s3952_s16 = sadd.s32 4294967295, %s3898_s15   ;;  %s3588_s17 = sadd.s32 4294967294, %s3898_s15   ;;  %s3898_s15 = sphi %s3937_s15, %s4787_s15   ;;  %s3894_s14 = sphi %s3935_s14, %s4786_s14   ;;  %s3890_s13 = sphi %s3933_s13, %s4785_s13   ;;  %s3886_s12 = sphi %s3931_s12, %s4784_s12  }
   0x4   : > { %s3956_s18 = sadd.s32 1, %s3898_s15   ;;  %s91_s19 = sadd.s32 1, %s3894_s14 }
   0x5   : > { %s88_s20 = ssub.s32 %s3898_s15, %s3956_s18  ;;  %p101_p0 = scmp.ne.s32.totalorder %s3894_s14, %s3890_s13 }
   0x6   : > { %p89_p1 = scmp.eq.s32.totalorder %s88_s20, 0  ;;  %p102_p2 = scmp.eq.s32.totalorder %s3952_s16, 1 }
   0x7   : > { %p107_p3 = scmp.ne.s32.totalorder %s3890_s13, %s3886_s12  ;;  %p108_p4 = scmp.eq.s32.totalorder %s3588_s17, 1 }
   0x8   : > { %s3967_s21 = scalar_select %p89_p1, %s3894_s14, %s91_s19  }
   0x9   : > { %p3969_p5 = por %p102_p2, %p101_p0  ;;  %p3973_p6 = por %p108_p4, %p107_p3 }
   0xa   : > { %p3591_p7 = scmp.ge.s32.totalorder %s3898_s15, 1  ;;  %p140_p8 = scmp.lt.s32.totalorder %s3898_s15, 3 }
   0xc   : > { %p141_p9 = pnand %p3591_p7, %p140_p8 }
   0xd   : > { %p164_p10 = scmp.lt.s32.totalorder (!%p141_p9), %s3952_s16, 1  ;;  %s3900_s29 = smov (!%p141_p9), 32   ;;  %v3901_v5 = vmov (!%p141_p9), 0.0   ;;  %v169_v9 = vlaneseq (!%p141_p9)  ;;  %v3909_v13 = vmov (!%p141_p9), 0   ;;  %vm4687_vm1 = vcmask (!%p141_p9), 1043456   ;;  %v3595_v22 = vld [vmem:[%s4673_s1 + $0x8] sm:$0xff] (!%p141_p9) }
   0xe   : > { %144 = sbr.rel (%p141_p9) target bundleno = 501 (0x1f5), region = 32  ;;  %498 = vmatprep.mubr.f32.mxu0 (!%p141_p9), %v3901_v5  ;;  %569 = vmatprep.mubr.f32.mxu1 (!%p141_p9), %v3901_v5  ;;  %s3902_s30 = smov (!%p141_p9), 33   ;;  %vm4676_vm3 = vcmask (!%p141_p9), 31744   ;;  %v306_v37 = vld [vmem:[%s4674_s2] sm:$0xff] (!%p141_p9) }
   0xf   : > { %s3903_s4 = smov (!%p141_p9), 31   ;;  %s3904_s5 = smov (!%p141_p9), 1   ;;  %v4068_v10 = vand.u32 (!%p141_p9), 127, %v169_v9  ;;  %3831 = vset.pattern.permute.xlu0 (!%p141_p9), %v3909_v13  ;;  %v369_v56 = vld [vmem:[%s4673_s1] sm:$0xff] (!%p141_p9) }
  0x10   : > { %s3905_s6 = smov (!%p141_p9), 127   ;;  %s3906_s7 = smov (!%p141_p9), 97  }
  0x11   : > { %s3907_s8 = smov (!%p141_p9), 96   ;;  %s3908_s9 = smov (!%p141_p9), 95   ;;  %vm386_vm0 = vcmp.lt.s32.totalorder (!%p141_p9), %v4068_v10, 32  ;;  %vm274_vm2 = vcmp.ge.s32.totalorder (!%p141_p9), %v4068_v10, 32  ;;  %v4080_v17 = vadd.s32 (!%p141_p9), 128, %v4068_v10  ;;  %v4094_v24 = vadd.s32 (!%p141_p9), 256, %v4068_v10 }
  0x12   : > { %v4102_v27 = vadd.s32 (!%p141_p9), 384, %v4068_v10  ;;  %vm344_vm4 = vcmp.lt.s32.totalorder (!%p141_p9), %v4068_v10, 33  ;;  %v182_v40 = vand.u32 (!%p141_p9), 31, %v4068_v10  ;;  %v4156_v45 = vadd.s32 (!%p141_p9), 896, %v4068_v10  ;;  %s161_s17 = sand.u32 (!%p141_p9), 1, %s3890_s13  }
  0x13   : > { %v189_v26 = vand.u32 (!%p141_p9), 31, %v4080_v17  ;;  %v196_v34 = vand.u32 (!%p141_p9), 31, %v4094_v24  ;;  %v4159_v46 = vadd.s32 (!%p141_p9), 640, %v4068_v10  ;;  %v4162_v47 = vadd.s32 (!%p141_p9), 768, %v4068_v10  ;;  %s3592_s19 = sshll.u32 (!%p141_p9), %s161_s17, 6 }
  0x14   : > { %v203_v36 = vand.u32 (!%p141_p9), 31, %v4102_v27  ;;  %v4165_v50 = vadd.s32 (!%p141_p9), 512, %v4068_v10  ;;  %vm4169_vm8 = vcmp.ge.s32.totalorder (!%p141_p9), %v182_v40, 1  ;;  %v231_v57 = vand.u32 (!%p141_p9), 31, %v4156_v45  ;;  %s163_s20 = scalar_lea.vmem (!%p141_p9), [#allocation2], %s3592_s19 }
  0x15   : > { %s165_s24 = scalar_select %p164_p10, %s3952_s16, 1  ;;  %vm4124_vm5 = vcmp.ge.s32.totalorder %v189_v26, 1  ;;  %vm4143_vm6 = vcmp.ge.s32.totalorder %v196_v34, 1  ;;  %vm353_vm9 = vmand %vm274_vm2, %vm4169_vm8  ;;  %v217_v58 = vand.u32 31, %v4159_v46  ;;  %v224_v59 = vand.u32 31, %v4162_v47 }
  0x16   : > { %vm4151_vm7 = vcmp.ge.s32.totalorder %v203_v36, 1  ;;  %v210_v60 = vand.u32 31, %v4165_v50  ;;  %vm4201_vm10 = vcmp.ge.s32.totalorder %v231_v57, 1  ;;  %vm1045_vm14 = vcmp.lt.s32.totalorder %v4068_v10, 31 }
  0x17   : > { %s3716_s25 = sshll.u32 %s165_s24, 5  ;;  %vm4205_vm11 = vcmp.ge.s32.totalorder %v217_v58, 1  ;;  %vm4209_vm12 = vcmp.ge.s32.totalorder %v224_v59, 1  ;;  %vm4240_vm15 = vcmp.lt.s32.totalorder %v189_v26, 31  ;;  %v4710_v26 = vmov 0  ;;  %s3717_s24 = sshll.u32 %s3952_s16, 10 }
  0x18   : > { %s168_s28 = scalar_lea.vmem %s4672_s0, %s3716_s25  ;;  %vm4213_vm13 = vcmp.ge.s32.totalorder %v210_v60, 1  ;;  %v4721_v50 = vmov 0  ;;  %s3529_s25 = sshll.u32 %s163_s20, 4  ;;  %s4630_s25 = int_to_ptr.vmem [resolvable:$true] %s3529_s25 }
  0x19   : > { %v3984_v0 = vld [vmem:[%s168_s28 + $0x8] sm:$0xff]  ;;  %v3986_v1 = vld [vmem:[%s168_s28] sm:$0xff]  ;;  %v3994_v3 = vld [vmem:[%s168_s28 + $0x18] sm:$0xff]  ;;  %s3515_s16 = scalar_lea.sflag [#allocation3], %s161_s17 }
  0x1a   : > { %374 = vrot.lane.b32.xlu1 %v3984_v0, %s3900_s29  ;;  %370 = vrot.lane.b32.xlu0 %v3986_v1, %s3900_s29  ;;  %v3992_v2 = vcombine.high %v3986_v1, %v3986_v1  ;;  %v3996_v4 = vld [vmem:[%s168_s28 + $0x10] sm:$0xff]  ;;  %v4004_v6 = vcombine.high %v3984_v0, %v3984_v0  ;;  %v4008_v7 = vcombine.high %v3994_v3, %v3994_v3  ;;  %s4628_s28 = scalar_lea.hbm %s4675_s3, %s3717_s24 }
  0x1b   : > { %v4014_v8 = vcombine.high %v3996_v4, %v3996_v4 }
  0x1e   : > { %378 = vrot.lane.b32.xlu1 %v3996_v4, %s3900_s29  ;;  %372 = vrot.lane.b32.xlu0 %v3992_v2, %s3900_s29 }
  0x22   : > { %376 = vrot.lane.b32.xlu1 %v4004_v6, %s3900_s29  ;;  %384 = vrot.lane.b32.xlu0 %v4008_v7, %s3900_s29 }
  0x26   : > { %382 = vrot.lane.b32.xlu1 %v3994_v3, %s3900_s29  ;;  %380 = vrot.lane.b32.xlu0 %v4014_v8, %s3900_s29  ;;  %s3836_s29 = scalar_lea.vmem %s4630_s25, 1024 }
  0x27   : > { %p3837_p11 = scmp.ne.s32.totalorder %s4630_s25, %s3836_s29 }
  0x29   : > { %p3838_p12 = pnand %p3837_p11, %p3969_p5 }
  0x2a   : > { %330 = vrot.lane.b32.xlu1 %v3992_v2, %s3902_s30  ;;  %328 = vrot.lane.b32.xlu0 %v3986_v1, %s3902_s30 }
  0x2b   : > { %p3839_p13 = pneg %p3838_p12 }
  0x2e   : > { %334 = vrot.lane.b32.xlu1 %v4004_v6, %s3902_s30  ;;  %332 = vrot.lane.b32.xlu0 %v3984_v0, %s3902_s30 }
  0x32   : > { %336 = vrot.lane.b32.xlu1 %v3996_v4, %s3902_s30  ;;  %342 = vrot.lane.b32.xlu0 %v4008_v7, %s3902_s30 }
  0x36   : > { %340 = vrot.lane.b32.xlu1 %v3994_v3, %s3902_s30  ;;  %338 = vrot.lane.b32.xlu0 %v4014_v8, %s3902_s30  ;;  %s3910_s30 = smov [#allocation2]  }
  0x3a   : > { %1031 = vrot.lane.b32.xlu1 %v3992_v2, %s3903_s4  ;;  %1029 = vrot.lane.b32.xlu0 %v3986_v1, %s3903_s4 }
  0x3e   : > { %1035 = vrot.lane.b32.xlu1 %v4004_v6, %s3903_s4  ;;  %1033 = vrot.lane.b32.xlu0 %v3984_v0, %s3903_s4 }
  0x42   : > { %1037 = vrot.lane.b32.xlu1 %v3996_v4, %s3903_s4  ;;  %1043 = vrot.lane.b32.xlu0 %v4008_v7, %s3903_s4 }
  0x46   : > { %1041 = vrot.lane.b32.xlu1 %v3994_v3, %s3903_s4  ;;  %1039 = vrot.lane.b32.xlu0 %v4014_v8, %s3903_s4  ;;  %s3840_s4 = sshll.u32 %s3910_s30, 4  ;;  %s3841_s4 = int_to_ptr.vmem [resolvable:$false] %s3840_s4 }
  0x47   : > { %p3843_p0 = scmp.lt.s32.totalorder %s4630_s25, %s3841_s4 }
  0x4a   : > { %1393 = vrot.lane.b32.xlu1 %v3992_v2, %s3904_s5  ;;  %1391 = vrot.lane.b32.xlu0 %v3986_v1, %s3904_s5 }
  0x4e   : > { %1397 = vrot.lane.b32.xlu1 %v4004_v6, %s3904_s5  ;;  %1395 = vrot.lane.b32.xlu0 %v3984_v0, %s3904_s5 }
  0x52   : > { %1399 = vrot.lane.b32.xlu1 %v3996_v4, %s3904_s5  ;;  %1405 = vrot.lane.b32.xlu0 %v4008_v7, %s3904_s5 }
  0x56   : > { %1403 = vrot.lane.b32.xlu1 %v3994_v3, %s3904_s5  ;;  %1401 = vrot.lane.b32.xlu0 %v4014_v8, %s3904_s5  ;;  %s3842_s5 = scalar_lea.vmem %s3841_s4, 2048 }
  0x57   : > { %p3844_p1 = scmp.lt.s32.totalorder %s3842_s5, %s3836_s29 }
  0x59   : > { %p3845_p2 = por %p3844_p1, %p3843_p0 }
  0x5a   : > { %2062 = vrot.lane.b32.xlu1 %v3984_v0, %s3905_s6  ;;  %2060 = vrot.lane.b32.xlu0 %v3992_v2, %s3905_s6 }
  0x5b   : > { %p3846_p3 = pnand %p3845_p2, %p3839_p13 }
  0x5e   : > { %2066 = vrot.lane.b32.xlu1 %v3996_v4, %s3905_s6  ;;  %2064 = vrot.lane.b32.xlu0 %v4004_v6, %s3905_s6 }
  0x62   : > { %2068 = vrot.lane.b32.xlu1 %v4014_v8, %s3905_s6  ;;  %2058 = vrot.lane.b32.xlu0 %v3986_v1, %s3905_s6 }
  0x66   : > { %2072 = vrot.lane.b32.xlu1 %v4008_v7, %s3905_s6  ;;  %2070 = vrot.lane.b32.xlu0 %v3994_v3, %s3905_s6 }
  0x6a   : > { %2416 = vrot.lane.b32.xlu1 %v3984_v0, %s3906_s7  ;;  %2414 = vrot.lane.b32.xlu0 %v3992_v2, %s3906_s7 }
  0x6e   : > { %2420 = vrot.lane.b32.xlu1 %v3996_v4, %s3906_s7  ;;  %2418 = vrot.lane.b32.xlu0 %v4004_v6, %s3906_s7 }
  0x72   : > { %2422 = vrot.lane.b32.xlu1 %v4014_v8, %s3906_s7  ;;  %2412 = vrot.lane.b32.xlu0 %v3986_v1, %s3906_s7 }
  0x76   : > { %2426 = vrot.lane.b32.xlu1 %v4008_v7, %s3906_s7  ;;  %2424 = vrot.lane.b32.xlu0 %v3994_v3, %s3906_s7 }
  0x7a   : > { %2778 = vrot.lane.b32.xlu1 %v3984_v0, %s3907_s8  ;;  %2776 = vrot.lane.b32.xlu0 %v3992_v2, %s3907_s8 }
  0x7e   : > { %2782 = vrot.lane.b32.xlu1 %v3996_v4, %s3907_s8  ;;  %2780 = vrot.lane.b32.xlu0 %v4004_v6, %s3907_s8 }
  0x82   : > { %2788 = vrot.lane.b32.xlu1 %v4008_v7, %s3907_s8  ;;  %2774 = vrot.lane.b32.xlu0 %v3986_v1, %s3907_s8 }
  0x86   : > { %2786 = vrot.lane.b32.xlu1 %v3994_v3, %s3907_s8  ;;  %2784 = vrot.lane.b32.xlu0 %v4014_v8, %s3907_s8 }
  0x8a   : > { %3132 = vrot.lane.b32.xlu1 %v3984_v0, %s3908_s9  ;;  %3130 = vrot.lane.b32.xlu0 %v3992_v2, %s3908_s9 }
  0x8c   : > { %v375_v11 = vpop.permute.xlu1 %374  ;;  %v371_v12 = vpop.permute.xlu0 %370 }
  0x8e   : > { %3136 = vrot.lane.b32.xlu1 %v3996_v4, %s3908_s9  ;;  %3134 = vrot.lane.b32.xlu0 %v4004_v6, %s3908_s9 }
  0x90   : > { %v379_v14 = vpop.permute.xlu1 %378  ;;  %v373_v15 = vpop.permute.xlu0 %372 }
  0x91   : > { %v393_v16 = vsel %vm386_vm0, %v371_v12, %v373_v15  ;;  %v392_v25 = vsel %vm386_vm0, %v373_v15, %v375_v11 }
  0x92   : > { %3138 = vrot.lane.b32.xlu1 %v4014_v8, %s3908_s9  ;;  %3128 = vrot.lane.b32.xlu0 %v3986_v1, %s3908_s9 }
  0x93   : > { %3596 = vmatprep.subr.msk.mxu0 %vm4687_vm1, %v393_v16 }
  0x94   : > { %v377_v18 = vpop.permute.xlu1 %376  ;;  %v385_v19 = vpop.permute.xlu0 %384 }
  0x95   : > { %v394_v20 = vsel %vm386_vm0, %v385_v19, %v371_v12  ;;  %v391_v21 = vsel %vm386_vm0, %v375_v11, %v377_v18  ;;  %v390_v33 = vsel %vm386_vm0, %v377_v18, %v379_v14 }
  0x96   : > { %3599 = vmatprep.subr.msk.mxu1 %vm4687_vm1, %v391_v21  ;;  %3142 = vrot.lane.b32.xlu1 %v4008_v7, %s3908_s9  ;;  %v395_v23 = vsel %vm274_vm2, %v394_v20, 0.0 }
  0x97   : > { %3140 = vrot.lane.b32.xlu0 %v3994_v3, %s3908_s9  ;;  %3597 = vmatpush1.msk.msra.mxu0 %vm4687_vm1, %v395_v23 }
  0x98   : > { %3600 = vmatpush1.msk.msra.mxu1 %vm4687_vm1, %v392_v25  ;;  %v383_v28 = vpop.permute.xlu1 %382  ;;  %v381_v29 = vpop.permute.xlu0 %380  ;;  %3598 = vmatmul.mubr.msk.f32.vlgmr.msra.gmra.mrb[0].mxu0 %vm4676_vm3, %v3595_v22 }
  0x99   : > { %v387_v30 = vsel %vm386_vm0, %v383_v28, %v385_v19  ;;  %v388_v31 = vsel %vm386_vm0, %v381_v29, %v383_v28  ;;  %v389_v32 = vsel %vm386_vm0, %v379_v14, %v381_v29  ;;  %3601 = vmatmul.mubr.msk.f32.vlgmr.msra.gmra.mrb[0].mxu1 %vm4676_vm3, %v3595_v22  ;;  %640 = vmatprep.mubr.f32.mxu0 %v3901_v5  ;;  %v4706_v14 = vmov 0 }
  0x9a   : > { %3602 = vmatprep.subr.msk.mxu0 %vm4687_vm1, %v389_v32  ;;  %3605 = vmatprep.subr.msk.mxu1 %vm4687_vm1, %v387_v30  ;;  %v4707_v14 = vsel %vm4213_vm13, 4294967295, %v4706_v14  ;;  %v4708_v29 = vmov 0  ;;  %vm4257_vm0 = vcmp.lt.s32.totalorder %v196_v34, 31 }
  0x9b   : > { %3603 = vmatpush1.msk.msra.mxu0 %vm4687_vm1, %v390_v33  ;;  %3606 = vmatpush1.msk.msra.mxu1 %vm4687_vm1, %v388_v31  ;;  %v4709_v29 = vsel %vm4240_vm15, 4294967295, %v4708_v29  ;;  %v4711_v26 = vsel %vm4257_vm0, 4294967295, %v4710_v26  ;;  %v4712_v33 = vmov 0 }
  0x9c   : > { %v331_v38 = vpop.permute.xlu1 %330  ;;  %v329_v39 = vpop.permute.xlu0 %328  ;;  %711 = vmatprep.mubr.f32.mxu1 %v3901_v5  ;;  %3604 = vmatmul.mubr.msk.f32.vlgmr.msra.gmra.mrb[2].mxu0 %vm4676_vm3, %v3595_v22 }
  0x9d   : > { %v351_v41 = vsel %vm344_vm4, %v329_v39, %v331_v38  ;;  %3607 = vmatmul.mubr.msk.f32.vlgmr.msra.gmra.mrb[2].mxu1 %vm4676_vm3, %v3595_v22  ;;  %809 = vmatprep.mubr.f32.mxu0 %v3901_v5 }
  0x9e   : > { %v362_v42 = vsel %vm4124_vm5, %v351_v41, 0.0  ;;  %880 = vmatprep.mubr.f32.mxu1 %v3901_v5  ;;  %309 = vperm.xlu0 %3831, %v306_v37   ;;  %v3620_v41 = vld [vmem:[%s4673_s1 + $0x10] sm:$0xff] }
  0x9f   : > { %3608 = vmatprep.subr.msk.mxu0 %vm4687_vm1, %v362_v42 }
  0xa0   : > { %v335_v48 = vpop.permute.xlu1 %334  ;;  %v333_v49 = vpop.permute.xlu0 %332 }
  0xa1   : > { %v349_v52 = vsel %vm344_vm4, %v333_v49, %v335_v48  ;;  %v350_v53 = vsel %vm344_vm4, %v331_v38, %v333_v49  ;;  %v4719_v49 = vmov 0 }
  0xa2   : > { %v363_v54 = vsel %vm4143_vm6, %v350_v53, 0.0  ;;  %v364_v55 = vsel %vm4151_vm7, %v349_v52, 0.0 }
  0xa3   : > { %3611 = vmatprep.subr.msk.mxu1 %vm4687_vm1, %v364_v55 }
  0xa4   : > { %v337_v61 = vpop.permute.xlu1 %336  ;;  %3612 = vmatpush1.msk.msra.mxu1 %vm4687_vm1, %v363_v54  ;;  %v343_v62 = vpop.permute.xlu0 %342 }
  0xa5   : > { %v352_v63 = vsel %vm344_vm4, %v343_v62, %v329_v39  ;;  %3613 = vmatmul.mubr.msk.f32.vlgmr.msra.gmra.mrb[0].mxu1 %vm4676_vm3, %v369_v56  ;;  %v348_v15 = vsel %vm344_vm4, %v335_v48, %v337_v61  ;;  %v4714_v39 = vmov 0  ;;  %v4717_v48 = vmov 0 }
  0xa6   : > { %v361_v9 = vsel %vm353_vm9, %v352_v63, 0.0  ;;  %1022 = vmatprep.mubr.f32.mxu1 %v3901_v5  ;;  %v365_v28 = vsel %vm4213_vm13, %v348_v15, 0.0  ;;  %vm4269_vm9 = vcmp.lt.s32.totalorder %v182_v40, 31 }
  0xa7   : > { %3609 = vmatpush1.msk.msra.mxu0 %vm4687_vm1, %v361_v9  ;;  %v4715_v39 = vsel %vm4269_vm9, 4294967295, %v4714_v39 }
  0xa8   : > { %v341_v16 = vpop.permute.xlu1 %340  ;;  %v339_v18 = vpop.permute.xlu0 %338  ;;  %3610 = vmatmul.mubr.msk.f32.vlgmr.msra.gmra.mrb[0].mxu0 %vm4676_vm3, %v369_v56 }
  0xa9   : > { %v345_v19 = vsel %vm344_vm4, %v341_v16, %v343_v62  ;;  %v346_v20 = vsel %vm344_vm4, %v339_v18, %v341_v16  ;;  %v347_v21 = vsel %vm344_vm4, %v337_v61, %v339_v18  ;;  %951 = vmatprep.mubr.f32.mxu0 %v3901_v5  ;;  %vm4263_vm4 = vcmp.lt.s32.totalorder %v203_v36, 31 }
  0xaa   : > { %v368_v22 = vsel %vm4201_vm10, %v345_v19, 0.0  ;;  %v366_v23 = vsel %vm4205_vm11, %v347_v21, 0.0  ;;  %v367_v25 = vsel %vm4209_vm12, %v346_v20, 0.0  ;;  %v4713_v33 = vsel %vm4263_vm4, 4294967295, %v4712_v33 }
  0xab   : > { %3614 = vmatprep.subr.msk.mxu0 %vm4687_vm1, %v366_v23  ;;  %3617 = vmatprep.subr.msk.mxu1 %vm4687_vm1, %v368_v22 }
  0xac   : > { %v1032_v30 = vpop.permute.xlu1 %1031  ;;  %3615 = vmatpush1.msk.msra.mxu0 %vm4687_vm1, %v365_v28  ;;  %3618 = vmatpush1.msk.msra.mxu1 %vm4687_vm1, %v367_v25  ;;  %v1030_v31 = vpop.permute.xlu0 %1029  ;;  %v3633_v25 = vld [vmem:[%s4673_s1 + $0x18] sm:$0xff] }
  0xad   : > { %v1052_v32 = vsel %vm1045_vm14, %v1030_v31, %v1032_v30  ;;  %3619 = vmatmul.mubr.msk.f32.vlgmr.msra.gmra.mrb[2].mxu1 %vm4676_vm3, %v369_v56  ;;  %3616 = vmatmul.mubr.msk.f32.vlgmr.msra.gmra.mrb[2].mxu0 %vm4676_vm3, %v369_v56  ;;  %vm1054_vm3 = vmand %vm274_vm2, %vm4269_vm9  ;;  %vm4301_vm2 = vcmp.lt.s32.totalorder %v217_v58, 31  ;;  %vm4305_vm9 = vcmp.lt.s32.totalorder %v224_v59, 31 }
  0xae   : > { %v1063_v17 = vsel %vm4240_vm15, %v1052_v32, 0.0  ;;  %1163 = vmatprep.mubr.f32.mxu0 %v3901_v5  ;;  %1234 = vmatprep.mubr.f32.mxu1 %v3901_v5  ;;  %v4720_v49 = vsel %vm4301_vm2, 4294967295, %v4719_v49  ;;  %v4722_v50 = vsel %vm4305_vm9, 4294967295, %v4721_v50 }
  0xaf   : > { %3621 = vmatprep.subr.msk.mxu0 %vm4687_vm1, %v1063_v17 }
  0xb0   : > { %v1036_v37 = vpop.permute.xlu1 %1035  ;;  %v1034_v38 = vpop.permute.xlu0 %1033 }
  0xb1   : > { %v1050_v24 = vsel %vm1045_vm14, %v1034_v38, %v1036_v37  ;;  %v1051_v34 = vsel %vm1045_vm14, %v1032_v30, %v1034_v38 }
  0xb2   : > { %v1064_v27 = vsel %vm4257_vm0, %v1051_v34, 0.0  ;;  %v1065_v36 = vsel %vm4263_vm4, %v1050_v24, 0.0  ;;  %vm4716_vm0 = vcmask 31744   ;;  %vm4297_vm4 = vcmp.lt.s32.totalorder %v231_v57, 31 }
  0xb3   : > { %3624 = vmatprep.subr.msk.mxu1 %vm4687_vm1, %v1065_v36  ;;  %v4718_v48 = vsel %vm4297_vm4, 4294967295, %v4717_v48 }
  0xb4   : > { %v1038_v40 = vpop.permute.xlu1 %1037  ;;  %3625 = vmatpush1.msk.msra.mxu1 %vm4687_vm1, %v1064_v27  ;;  %v1044_v42 = vpop.permute.xlu0 %1043 }
  0xb5   : > { %v1053_v46 = vsel %vm1045_vm14, %v1044_v42, %v1030_v31  ;;  %3626 = vmatmul.mubr.msk.f32.vlgmr.msra.gmra.mrb[0].mxu1 %vm4716_vm0, %v3620_v41  ;;  %vm4309_vm0 = vcmp.lt.s32.totalorder %v210_v60, 31  ;;  %v1049_v53 = vsel %vm1045_vm14, %v1036_v37, %v1038_v40 }
  0xb6   : > { %v1062_v47 = vsel %vm1054_vm3, %v1053_v46, 0.0  ;;  %1376 = vmatprep.mubr.f32.mxu1 %v3901_v5  ;;  %vm4725_vm3 = vcmask 31744   ;;  %v1066_v62 = vsel %vm4309_vm0, %v1049_v53, 0.0  ;;  %v3646_v53 = vld [vmem:[%s4673_s1 + $0x20] sm:$0xff] }
  0xb7   : > { %3622 = vmatpush1.msk.msra.mxu0 %vm4687_vm1, %v1062_v47 }
  0xb8   : > { %v1042_v54 = vpop.permute.xlu1 %1041  ;;  %v1040_v55 = vpop.permute.xlu0 %1039  ;;  %3623 = vmatmul.mubr.msk.f32.vlgmr.msra.gmra.mrb[0].mxu0 %vm4725_vm3, %v3620_v41  ;;  %vm1407_vm3 = vcmp.lt.s32.totalorder %v4068_v10, 1 }
  0xb9   : > { %v1046_v56 = vsel %vm1045_vm14, %v1042_v54, %v1044_v42  ;;  %v1047_v57 = vsel %vm1045_vm14, %v1040_v55, %v1042_v54  ;;  %v1048_v58 = vsel %vm1045_vm14, %v1038_v40, %v1040_v55  ;;  %1305 = vmatprep.mubr.f32.mxu0 %v3901_v5  ;;  %vm4726_vm14 = vcmask 31744  }
  0xba   : > { %v1069_v59 = vsel %vm4297_vm4, %v1046_v56, 0.0  ;;  %v1067_v60 = vsel %vm4301_vm2, %v1048_v58, 0.0  ;;  %v1068_v61 = vsel %vm4305_vm9, %v1047_v57, 0.0  ;;  %vm4727_vm9 = vmmov %vm4726_vm14 }
  0xbb   : > { %3627 = vmatprep.subr.msk.mxu0 %vm4687_vm1, %v1067_v60  ;;  %3630 = vmatprep.subr.msk.mxu1 %vm4687_vm1, %v1069_v59 }
  0xbc   : > { %v1394_v63 = vpop.permute.xlu1 %1393  ;;  %3628 = vmatpush1.msk.msra.mxu0 %vm4687_vm1, %v1066_v62  ;;  %3631 = vmatpush1.msk.msra.mxu1 %vm4687_vm1, %v1068_v61  ;;  %v1392_v9 = vpop.permute.xlu0 %1391 }
  0xbd   : > { %v1414_v15 = vsel %vm1407_vm3, %v1392_v9, %v1394_v63  ;;  %3632 = vmatmul.mubr.msk.f32.vlgmr.msra.gmra.mrb[2].mxu1 %vm4726_vm14, %v3620_v41  ;;  %3629 = vmatmul.mubr.msk.f32.vlgmr.msra.gmra.mrb[2].mxu0 %vm4727_vm9, %v3620_v41  ;;  %vm4728_vm14 = vmmov %vm4727_vm9 }
  0xbe   : > { %v1417_v16 = vsel %vm4124_vm5, %v1414_v15, 0.0  ;;  %1517 = vmatprep.mubr.f32.mxu0 %v3901_v5  ;;  %1588 = vmatprep.mubr.f32.mxu1 %v3901_v5 }
  0xbf   : > { %3634 = vmatprep.subr.msk.mxu0 %vm4687_vm1, %v1417_v16 }
  0xc0   : > { %v1398_v18 = vpop.permute.xlu1 %1397  ;;  %v1396_v19 = vpop.permute.xlu0 %1395 }
  0xc1   : > { %v1412_v20 = vsel %vm1407_vm3, %v1396_v19, %v1398_v18  ;;  %v1413_v21 = vsel %vm1407_vm3, %v1394_v63, %v1396_v19 }
  0xc2   : > { %v1418_v22 = vsel %vm4143_vm6, %v1413_v21, 0.0  ;;  %v1419_v23 = vsel %vm4151_vm7, %v1412_v20, 0.0 }
  0xc3   : > { %3637 = vmatprep.subr.msk.mxu1 %vm4687_vm1, %v1419_v23 }
  0xc4   : > { %v1400_v28 = vpop.permute.xlu1 %1399  ;;  %3638 = vmatpush1.msk.msra.mxu1 %vm4687_vm1, %v1418_v22  ;;  %v1406_v30 = vpop.permute.xlu0 %1405 }
  0xc5   : > { %v1415_v31 = vsel %vm1407_vm3, %v1406_v30, %v1392_v9  ;;  %3639 = vmatmul.mubr.msk.f32.vlgmr.msra.gmra.mrb[0].mxu1 %vm4727_vm9, %v3633_v25  ;;  %v1411_v17 = vsel %vm1407_vm3, %v1398_v18, %v1400_v28 }
  0xc6   : > { %v1416_v32 = vsel %vm4169_vm8, %v1415_v31, 0.0  ;;  %1730 = vmatprep.mubr.f32.mxu1 %v3901_v5  ;;  %v1420_v42 = vsel %vm4213_vm13, %v1411_v17, 0.0  ;;  %vm4731_vm13 = vmmov %vm4727_vm9  ;;  %v3672_v17 = vld [vmem:[%s4673_s1 + $0x30] sm:$0xff] }
  0xc7   : > { %3635 = vmatpush1.msk.msra.mxu0 %vm4687_vm1, %v1416_v32 }
  0xc8   : > { %v1404_v37 = vpop.permute.xlu1 %1403  ;;  %v1402_v38 = vpop.permute.xlu0 %1401  ;;  %3636 = vmatmul.mubr.msk.f32.vlgmr.msra.gmra.mrb[0].mxu0 %vm4728_vm14, %v3633_v25  ;;  %vm4729_vm14 = vmmov %vm4727_vm9 }
  0xc9   : > { %v1408_v24 = vsel %vm1407_vm3, %v1404_v37, %v1406_v30  ;;  %v1409_v34 = vsel %vm1407_vm3, %v1402_v38, %v1404_v37  ;;  %v1410_v27 = vsel %vm1407_vm3, %v1400_v28, %v1402_v38  ;;  %1659 = vmatprep.mubr.f32.mxu0 %v3901_v5  ;;  %vm2074_vm3 = vcmp.lt.s32.totalorder %v4068_v10, 127 }
  0xca   : > { %v1423_v36 = vsel %vm4201_vm10, %v1408_v24, 0.0  ;;  %v1421_v41 = vsel %vm4205_vm11, %v1410_v27, 0.0  ;;  %v1422_v40 = vsel %vm4209_vm12, %v1409_v34, 0.0 }
  0xcb   : > { %3640 = vmatprep.subr.msk.mxu0 %vm4687_vm1, %v1421_v41  ;;  %3643 = vmatprep.subr.msk.mxu1 %vm4687_vm1, %v1423_v36 }
  0xcc   : > { %v2063_v46 = vpop.permute.xlu1 %2062  ;;  %3641 = vmatpush1.msk.msra.mxu0 %vm4687_vm1, %v1420_v42  ;;  %3644 = vmatpush1.msk.msra.mxu1 %vm4687_vm1, %v1422_v40  ;;  %v2061_v47 = vpop.permute.xlu0 %2060 }
  0xcd   : > { %3642 = vmatmul.mubr.msk.f32.vlgmr.msra.gmra.mrb[2].mxu0 %vm4727_vm9, %v3633_v25  ;;  %3645 = vmatmul.mubr.msk.f32.vlgmr.msra.gmra.mrb[2].mxu1 %vm4729_vm14, %v3633_v25  ;;  %v2080_v54 = vsel %vm2074_vm3, %v2061_v47, %v2063_v46  ;;  %vm4730_vm14 = vnez %v4713_v33 }
  0xce   : > { %3647 = vmatprep.subr.msk.mxu0 %vm4687_vm1, %v3992_v2  ;;  %3650 = vmatprep.subr.msk.mxu1 %vm4687_vm1, %v4004_v6 }
  0xcf   : > { %3648 = vmatpush1.msk.msra.mxu0 %vm4687_vm1, %v3986_v1  ;;  %1830 = vmatprep.mubr.f32.mxu0 %v3901_v5  ;;  %v2084_v1 = vsel %vm4240_vm15, %v2080_v54, 0.0 }
  0xd0   : > { %v2067_v55 = vpop.permute.xlu1 %2066  ;;  %3651 = vmatpush1.msk.msra.mxu1 %vm4687_vm1, %v3984_v0  ;;  %1901 = vmatprep.mubr.f32.mxu1 %v3901_v5  ;;  %v2065_v2 = vpop.permute.xlu0 %2064 }
  0xd1   : > { %3653 = vmatprep.subr.msk.mxu0 %vm4687_vm1, %v4014_v8  ;;  %v2078_v6 = vsel %vm2074_vm3, %v2065_v2, %v2067_v55  ;;  %3649 = vmatmul.mubr.msk.f32.vlgmr.msra.gmra.mrb[0].mxu0 %vm4727_vm9, %v3646_v53  ;;  %v2079_v0 = vsel %vm2074_vm3, %v2063_v46, %v2065_v2  ;;  %vm4733_vm9 = vnez %v4715_v39 }
  0xd2   : > { %v2086_v56 = vsel %vm4730_vm14, %v2078_v6, 0.0  ;;  %3652 = vmatmul.mubr.msk.f32.vlgmr.msra.gmra.mrb[0].mxu1 %vm4731_vm13, %v3646_v53  ;;  %3654 = vmatpush1.msk.msra.mxu0 %vm4687_vm1, %v3996_v4  ;;  %vm4732_vm13 = vnez %v4711_v26  ;;  %vm4734_vm14 = vcmask 31744   ;;  %v3685_v6 = vld [vmem:[%s4673_s1 + $0x38] sm:$0xff] }
  0xd3   : > { %3656 = vmatprep.subr.msk.mxu1 %vm4687_vm1, %v4008_v7  ;;  %3660 = vmatprep.subr.msk.mxu0 %vm4687_vm1, %v2084_v1  ;;  %v2085_v58 = vsel %vm4732_vm13, %v2079_v0, 0.0  ;;  %vm4735_vm15 = vmmov %vm4734_vm14  ;;  %vm4738_vm13 = vcmask 1043456  }
  0xd4   : > { %3657 = vmatpush1.msk.msra.mxu1 %vm4687_vm1, %v3994_v3  ;;  %v2069_v8 = vpop.permute.xlu1 %2068  ;;  %2043 = vmatprep.mubr.f32.mxu1 %v3901_v5  ;;  %v2059_v57 = vpop.permute.xlu0 %2058  ;;  %v3659_v3 = vld [vmem:[%s4673_s1 + $0x28] sm:$0xff] }
  0xd5   : > { %3663 = vmatprep.subr.msk.mxu1 %vm4687_vm1, %v2086_v56  ;;  %v2081_v4 = vsel %vm2074_vm3, %v2059_v57, %v2061_v47  ;;  %1972 = vmatprep.mubr.f32.mxu0 %v3901_v5  ;;  %v2077_v59 = vsel %vm2074_vm3, %v2067_v55, %v2069_v8 }
  0xd6   : > { %v2083_v7 = vsel %vm4733_vm9, %v2081_v4, 0.0  ;;  %3658 = vmatmul.mubr.msk.f32.vlgmr.msra.gmra.mrb[2].mxu1 %vm4734_vm14, %v3646_v53  ;;  %3655 = vmatmul.mubr.msk.f32.vlgmr.msra.gmra.mrb[2].mxu0 %vm4735_vm15, %v3646_v53  ;;  %vm4736_vm15 = vnez %v4722_v50  ;;  %vm2428_vm9 = vcmp.lt.s32.totalorder %v4068_v10, 97  ;;  %v2087_v19 = vsel %vm4309_vm0, %v2077_v59, 0.0 }
  0xd7   : > { %3664 = vmatpush1.msk.msra.mxu1 %vm4687_vm1, %v2085_v58  ;;  %3661 = vmatpush1.msk.msra.mxu0 %vm4687_vm1, %v2083_v7  ;;  %vm4737_vm1 = vmmov %vm4734_vm14 }
  0xd8   : > { %v2073_v60 = vpop.permute.xlu1 %2072  ;;  %v2071_v61 = vpop.permute.xlu0 %2070  ;;  %2184 = vmatprep.mubr.f32.mxu0 %v3901_v5  ;;  %2255 = vmatprep.mubr.f32.mxu1 %v3901_v5 }
  0xd9   : > { %v2082_v62 = vsel %vm2074_vm3, %v2073_v60, %v2059_v57  ;;  %v2075_v63 = vsel %vm2074_vm3, %v2071_v61, %v2073_v60  ;;  %v2076_v9 = vsel %vm2074_vm3, %v2069_v8, %v2071_v61  ;;  %vm4739_vm3 = vmmov %vm4738_vm13 }
  0xda   : > { %v2090_v15 = vsel %vm4297_vm4, %v2082_v62, 0.0  ;;  %v2088_v16 = vsel %vm4301_vm2, %v2076_v9, 0.0  ;;  %v2089_v18 = vsel %vm4736_vm15, %v2075_v63, 0.0  ;;  %3662 = vmatmul.mubr.msk.f32.vlgmr.msra.gmra.mrb[0].mxu0 %vm4734_vm14, %v3659_v3  ;;  %3665 = vmatmul.mubr.msk.f32.vlgmr.msra.gmra.mrb[0].mxu1 %vm4737_vm1, %v3659_v3  ;;  %vm4740_vm4 = vmmov %vm4739_vm3 }
  0xdb   : > { %3666 = vmatprep.subr.msk.mxu0 %vm4738_vm13, %v2088_v16  ;;  %3669 = vmatprep.subr.msk.mxu1 %vm4739_vm3, %v2090_v15  ;;  %vm4741_vm2 = vmmov %vm4739_vm3 }
  0xdc   : > { %v2417_v20 = vpop.permute.xlu1 %2416  ;;  %3667 = vmatpush1.msk.msra.mxu0 %vm4740_vm4, %v2087_v19  ;;  %3670 = vmatpush1.msk.msra.mxu1 %vm4741_vm2, %v2089_v18  ;;  %v2415_v21 = vpop.permute.xlu0 %2414  ;;  %vm4742_vm13 = vmmov %vm4737_vm1 }
  0xdd   : > { %v2434_v22 = vsel %vm2428_vm9, %v2415_v21, %v2417_v20  ;;  %2397 = vmatprep.mubr.f32.mxu1 %v3901_v5  ;;  %2326 = vmatprep.mubr.f32.mxu0 %v3901_v5  ;;  %vm4743_vm14 = vmmov %vm4741_vm2 }
  0xde   : > { %v2446_v23 = vsel %vm4124_vm5, %v2434_v22, 0.0  ;;  %3671 = vmatmul.mubr.msk.f32.vlgmr.msra.gmra.mrb[2].mxu1 %vm4737_vm1, %v3659_v3  ;;  %3668 = vmatmul.mubr.msk.f32.vlgmr.msra.gmra.mrb[2].mxu0 %vm4742_vm13, %v3659_v3  ;;  %vm4744_vm5 = vmmov %vm4741_vm2 }
  0xdf   : > { %3673 = vmatprep.subr.msk.mxu0 %vm4743_vm14, %v2446_v23  ;;  %2546 = vmatprep.mubr.f32.mxu0 %v3901_v5  ;;  %vm4745_vm4 = vmmov %vm4741_vm2  ;;  %vm289_vm2 = vcmp.lt.s32.totalorder %v4156_v45, 992 }
  0xe0   : > { %v2421_v25 = vpop.permute.xlu1 %2420  ;;  %v2419_v28 = vpop.permute.xlu0 %2418  ;;  %2617 = vmatprep.mubr.f32.mxu1 %v3901_v5  ;;  %vm4746_vm3 = vmmov %vm4737_vm1 }
  0xe1   : > { %v2432_v30 = vsel %vm2428_vm9, %v2419_v28, %v2421_v25  ;;  %v2433_v31 = vsel %vm2428_vm9, %v2417_v20, %v2419_v28  ;;  %vm4751_vm13 = vmmov %vm4745_vm4 }
  0xe2   : > { %v2447_v35 = vsel %vm4143_vm6, %v2433_v31, 0.0  ;;  %v2448_v32 = vsel %vm4151_vm7, %v2432_v30, 0.0  ;;  %vm4747_vm6 = vmmov %vm4745_vm4 }
  0xe3   : > { %3676 = vmatprep.subr.msk.mxu1 %vm4744_vm5, %v2448_v32  ;;  %vm4501_vm7 = vmand %vm289_vm2, %vm4201_vm10  ;;  %vm4750_vm10 = vnez %v4707_v14 }
  0xe4   : > { %v2423_v37 = vpop.permute.xlu1 %2422  ;;  %3677 = vmatpush1.msk.msra.mxu1 %vm4745_vm4, %v2447_v35  ;;  %v2413_v38 = vpop.permute.xlu0 %2412  ;;  %vm4752_vm14 = vmmov %vm4745_vm4 }
  0xe5   : > { %v2435_v24 = vsel %vm2428_vm9, %v2413_v38, %v2415_v21  ;;  %3678 = vmatmul.mubr.msk.f32.vlgmr.msra.gmra.mrb[0].mxu1 %vm4746_vm3, %v3672_v17  ;;  %v2431_v34 = vsel %vm2428_vm9, %v2421_v25, %v2423_v37  ;;  %vm4754_vm5 = vmmov %vm4745_vm4 }
  0xe6   : > { %v2445_v43 = vsel %vm4169_vm8, %v2435_v24, 0.0  ;;  %2759 = vmatprep.mubr.f32.mxu1 %v3901_v5  ;;  %vm2790_vm8 = vcmp.lt.s32.totalorder %v4068_v10, 96  ;;  %v2449_v47 = vsel %vm4750_vm10, %v2431_v34, 0.0  ;;  %vm4757_vm3 = vmmov %vm4745_vm4 }
  0xe7   : > { %3674 = vmatpush1.msk.msra.mxu0 %vm4747_vm6, %v2445_v43  ;;  %vm4758_vm6 = vmmov %vm4757_vm3 }
  0xe8   : > { %v2427_v27 = vpop.permute.xlu1 %2426  ;;  %v2425_v36 = vpop.permute.xlu0 %2424  ;;  %3675 = vmatmul.mubr.msk.f32.vlgmr.msra.gmra.mrb[0].mxu0 %vm4737_vm1, %v3672_v17 }
  0xe9   : > { %v2436_v51 = vsel %vm2428_vm9, %v2427_v27, %v2413_v38  ;;  %v2429_v41 = vsel %vm2428_vm9, %v2425_v36, %v2427_v27  ;;  %v2430_v11 = vsel %vm2428_vm9, %v2423_v37, %v2425_v36  ;;  %2688 = vmatprep.mubr.f32.mxu0 %v3901_v5  ;;  %vm4753_vm9 = vmmov %vm4745_vm4 }
  0xea   : > { %v2452_v40 = vsel %vm4501_vm7, %v2436_v51, 0.0  ;;  %v2450_v42 = vsel %vm4205_vm11, %v2430_v11, 0.0  ;;  %v2451_v46 = vsel %vm4209_vm12, %v2429_v41, 0.0  ;;  %vm4755_vm11 = vmmov %vm4737_vm1 }
  0xeb   : > { %3679 = vmatprep.subr.msk.mxu0 %vm4751_vm13, %v2450_v42  ;;  %3682 = vmatprep.subr.msk.mxu1 %vm4752_vm14, %v2452_v40  ;;  %vm4756_vm12 = vmmov %vm4737_vm1 }
  0xec   : > { %v2779_v53 = vpop.permute.xlu1 %2778  ;;  %3680 = vmatpush1.msk.msra.mxu0 %vm4753_vm9, %v2449_v47  ;;  %3683 = vmatpush1.msk.msra.mxu1 %vm4754_vm5, %v2451_v46  ;;  %v2777_v54 = vpop.permute.xlu0 %2776  ;;  %vm4759_vm7 = vmmov %vm4737_vm1  ;;  %vm3144_vm5 = vcmp.lt.s32.totalorder %v4068_v10, 95 }
  0xed   : > { %v2796_v12 = vsel %vm2790_vm8, %v2777_v54, %v2779_v53  ;;  %3684 = vmatmul.mubr.msk.f32.vlgmr.msra.gmra.mrb[2].mxu1 %vm4755_vm11, %v3672_v17  ;;  %3681 = vmatmul.mubr.msk.f32.vlgmr.msra.gmra.mrb[2].mxu0 %vm4756_vm12, %v3672_v17  ;;  %vm4760_vm1 = vmmov %vm4757_vm3 }
  0xee   : > { %3686 = vmatprep.subr.msk.mxu0 %vm4745_vm4, %v2796_v12  ;;  %2971 = vmatprep.mubr.f32.mxu1 %v3901_v5  ;;  %vm4761_vm10 = vmmov %vm4760_vm1 }
  0xef   : > { %2900 = vmatprep.mubr.f32.mxu0 %v3901_v5  ;;  %vm4762_vm13 = vmmov %vm4759_vm7 }
  0xf0   : > { %v2783_v13 = vpop.permute.xlu1 %2782  ;;  %v2781_v14 = vpop.permute.xlu0 %2780  ;;  %vm4763_vm14 = vmmov %vm4760_vm1 }
  0xf1   : > { %v2794_v55 = vsel %vm2790_vm8, %v2781_v14, %v2783_v13  ;;  %v2795_v2 = vsel %vm2790_vm8, %v2779_v53, %v2781_v14  ;;  %vm4764_vm9 = vmmov %vm4760_vm1 }
  0xf2   : > { %3689 = vmatprep.subr.msk.mxu1 %vm4757_vm3, %v2794_v55  ;;  %vm4765_vm11 = vmmov %vm4760_vm1 }
  0xf3   : > { %3690 = vmatpush1.msk.msra.mxu1 %vm4758_vm6, %v2795_v2  ;;  %vm4766_vm12 = vmmov %vm4759_vm7  ;;  %vm4770_vm6 = vnez %v4711_v26 }
  0xf4   : > { %v2789_v1 = vpop.permute.xlu1 %2788  ;;  %v2775_v56 = vpop.permute.xlu0 %2774  ;;  %3691 = vmatmul.mubr.msk.f32.vlgmr.msra.gmra.mrb[0].mxu1 %vm4759_vm7, %v3685_v6  ;;  %vm4767_vm4 = vmmov %vm4759_vm7  ;;  %vm4771_vm7 = vnez %v4713_v33 }
  0xf5   : > { %v2797_v0 = vsel %vm2790_vm8, %v2775_v56, %v2777_v54  ;;  %v2798_v8 = vsel %vm2790_vm8, %v2789_v1, %v2775_v56  ;;  %3113 = vmatprep.mubr.f32.mxu1 %v3901_v5  ;;  %vm4769_vm3 = vmmov %vm4760_vm1 }
  0xf6   : > { %v2806_v57 = vsel %vm289_vm2, %v2798_v8, 0.0  ;;  %3687 = vmatpush1.msk.msra.mxu0 %vm4760_vm1, %v2797_v0 }
  0xf7   : > { %3695 = vmatprep.subr.msk.mxu1 %vm4761_vm10, %v2806_v57  ;;  %3688 = vmatmul.mubr.msk.f32.vlgmr.msra.gmra.mrb[0].mxu0 %vm4762_vm13, %v3685_v6  ;;  %vm4772_vm10 = vmmov %vm4760_vm1 }
  0xf8   : > { %v2787_v4 = vpop.permute.xlu1 %2786  ;;  %v2785_v58 = vpop.permute.xlu0 %2784  ;;  %3042 = vmatprep.mubr.f32.mxu0 %v3901_v5  ;;  %vm4773_vm13 = vmmov %vm4767_vm4 }
  0xf9   : > { %v2791_v7 = vsel %vm2790_vm8, %v2787_v4, %v2789_v1  ;;  %v2792_v3 = vsel %vm2790_vm8, %v2785_v58, %v2787_v4  ;;  %v2793_v59 = vsel %vm2790_vm8, %v2783_v13, %v2785_v58  ;;  %vm4768_vm8 = vnez %v4709_v29  ;;  %v3698_v29 = vld [vmem:[%s4673_s1 + $0x40] sm:$0xff] }
  0xfa   : > { %3692 = vmatprep.subr.msk.mxu0 %vm4763_vm14, %v2792_v3  ;;  %3696 = vmatpush1.msk.msra.mxu1 %vm4764_vm9, %v2791_v7  ;;  %vm4774_vm14 = vnez %v4715_v39  ;;  %vm4775_vm9 = vmmov %vm4760_vm1 }
  0xfb   : > { %3693 = vmatpush1.msk.msra.mxu0 %vm4765_vm11, %v2793_v59  ;;  %3697 = vmatmul.mubr.msk.f32.vlgmr.msra.gmra.mrb[2].mxu1 %vm4766_vm12, %v3685_v6  ;;  %vm4776_vm11 = vnez %v4718_v48 }
  0xfc   : > { %v3133_v60 = vpop.permute.xlu1 %3132  ;;  %v3131_v61 = vpop.permute.xlu0 %3130  ;;  %3694 = vmatmul.mubr.msk.f32.vlgmr.msra.gmra.mrb[2].mxu0 %vm4767_vm4, %v3685_v6  ;;  %3333 = vmatprep.mubr.f32.mxu1 %v3901_v5  ;;  %vm3160_vm12 = vmand %vm289_vm2, %vm4776_vm11  ;;  %vm4777_vm2 = vnez %v4720_v49 }
  0xfd   : > { %v3150_v62 = vsel %vm3144_vm5, %v3131_v61, %v3133_v60  ;;  %3262 = vmatprep.mubr.f32.mxu0 %v3901_v5 }
  0xfe   : > { %v3162_v63 = vsel %vm4768_vm8, %v3150_v62, 0.0  ;;  %vm4778_vm8 = vmmov %vm4760_vm1 }
  0xff   : > { %3699 = vmatprep.subr.msk.mxu0 %vm4769_vm3, %v3162_v63  ;;  %vm4779_vm3 = vmmov %vm4760_vm1 }
 0x100   : > { %v3137_v9 = vpop.permute.xlu1 %3136  ;;  %v3135_v15 = vpop.permute.xlu0 %3134 }
 0x101   : > { %v3148_v16 = vsel %vm3144_vm5, %v3135_v15, %v3137_v9  ;;  %v3149_v18 = vsel %vm3144_vm5, %v3133_v60, %v3135_v15 }
 0x102   : > { %v3163_v19 = vsel %vm4770_vm6, %v3149_v18, 0.0  ;;  %v3164_v20 = vsel %vm4771_vm7, %v3148_v16, 0.0  ;;  %vm4780_vm6 = vmmov %vm4760_vm1 }
 0x103   : > { %3702 = vmatprep.subr.msk.mxu1 %vm4760_vm1, %v3164_v20  ;;  %vm4781_vm7 = vmmov %vm4760_vm1 }
 0x104   : > { %v3139_v21 = vpop.permute.xlu1 %3138  ;;  %3703 = vmatpush1.msk.msra.mxu1 %vm4772_vm10, %v3163_v19  ;;  %v3129_v22 = vpop.permute.xlu0 %3128  ;;  %vm4782_vm1 = vmmov %vm4767_vm4 }
 0x105   : > { %v3151_v23 = vsel %vm3144_vm5, %v3129_v22, %v3131_v61  ;;  %3704 = vmatmul.mubr.msk.f32.vlgmr.msra.gmra.mrb[0].mxu1 %vm4773_vm13, %v3698_v29  ;;  %v3147_v25 = vsel %vm3144_vm5, %v3137_v9, %v3139_v21 }
 0x106   : > { %v3161_v26 = vsel %vm4774_vm14, %v3151_v23, 0.0  ;;  %3475 = vmatprep.mubr.f32.mxu1 %v3901_v5  ;;  %v3165_v32 = vsel %vm4309_vm0, %v3147_v25, 0.0 }
 0x107   : > { %3700 = vmatpush1.msk.msra.mxu0 %vm4775_vm9, %v3161_v26 }
 0x108   : > { %v3143_v33 = vpop.permute.xlu1 %3142  ;;  %3701 = vmatmul.mubr.msk.f32.vlgmr.msra.gmra.mrb[0].mxu0 %vm4767_vm4, %v3698_v29 }
 0x109   : > { %v3152_v39 = vsel %vm3144_vm5, %v3143_v33, %v3129_v22  ;;  %v3141_v28 = vpop.permute.xlu0 %3140  ;;  %3404 = vmatprep.mubr.f32.mxu0 %v3901_v5 }
 0x10a   : > { %v3168_v30 = vsel %vm3160_vm12, %v3152_v39, 0.0  ;;  %v3145_v48 = vsel %vm3144_vm5, %v3141_v28, %v3143_v33  ;;  %v3146_v45 = vsel %vm3144_vm5, %v3139_v21, %v3141_v28  ;;  %vm4783_vm5 = vmmov %vm4782_vm1 }
 0x10b   : > { %v3166_v31 = vsel %vm4777_vm2, %v3146_v45, 0.0  ;;  %v3167_v35 = vsel %vm4736_vm15, %v3145_v48, 0.0  ;;  %3708 = vmatprep.subr.msk.mxu1 %vm4778_vm8, %v3168_v30 }
 0x10c   : > { %3705 = vmatprep.subr.msk.mxu0 %vm4779_vm3, %v3166_v31  ;;  %3709 = vmatpush1.msk.msra.mxu1 %vm4780_vm6, %v3167_v35 }
 0x10d   : > { %3706 = vmatpush1.msk.msra.mxu0 %vm4781_vm7, %v3165_v32  ;;  %3710 = vmatmul.mubr.msk.f32.vlgmr.msra.gmra.mrb[2].mxu1 %vm4782_vm1, %v3698_v29 }
 0x10e   : > { %3707 = vmatmul.mubr.msk.f32.vlgmr.msra.gmra.mrb[2].mxu0 %vm4783_vm5, %v3698_v29 }
 0x11d   : > { %v310_v5 = vpop.permute.xlu0 %309 }
 0x1d8   : > { %v3335_v10 = vpop.f32.mrb[0].mxu1 }
 0x1d9   : > { %v3492_v49 = vadd.f32 %v3335_v10, %v310_v5  ;;  %v3337_v50 = vpop.f32.mrb[1].mxu1 }
 0x1da   : > { %v3493_v17 = vadd.f32 %v3337_v50, %v310_v5 }
 0x1db   : > { %v3500_v52 = vmax.f32 %v3492_v49, 0.0  ;;  %v3264_v37 = vpop.f32.mrb[0].mxu0 }
 0x1dc   : > { %v3501_v38 = vmax.f32 %v3493_v17, 0.0  ;;  %v3490_v24 = vadd.f32 %v3264_v37, %v310_v5  ;;  %v3266_v43 = vpop.f32.mrb[1].mxu0 }
 0x1dd   : > { %3508 = vst [vmem:[%s163_s20 + $0x10] sm:$0xff] %v3500_v52  ;;  %v3491_v44 = vadd.f32 %v3266_v43, %v310_v5 }
 0x1de   : > { %3509 = vst [vmem:[%s163_s20 + $0x18] sm:$0xff] %v3501_v38  ;;  %v3498_v34 = vmax.f32 %v3490_v24, 0.0 }
 0x1df   : > { %v3499_v27 = vmax.f32 %v3491_v44, 0.0 }
 0x1e0   : > { %3506 = vst [vmem:[%s163_s20] sm:$0xff] %v3498_v34  ;;  %v3477_v36 = vpop.f32.mrb[2].mxu1 }
 0x1e1   : > { %3507 = vst [vmem:[%s163_s20 + $0x8] sm:$0xff] %v3499_v27  ;;  %v3406_v51 = vpop.f32.mrb[2].mxu0  ;;  %v3496_v41 = vadd.f32 %v3477_v36, %v310_v5  ;;  %v3479_v11 = vpop.f32.mrb[3].mxu1 }
 0x1e2   : > { %v3494_v40 = vadd.f32 %v3406_v51, %v310_v5  ;;  %v3408_v42 = vpop.f32.mrb[3].mxu0  ;;  %v3497_v46 = vadd.f32 %v3479_v11, %v310_v5 }
 0x1e3   : > { %v3504_v47 = vmax.f32 %v3496_v41, 0.0  ;;  %v3495_v53 = vadd.f32 %v3408_v42, %v310_v5 }
 0x1e4   : > { %v3502_v54 = vmax.f32 %v3494_v40, 0.0  ;;  %v3505_v12 = vmax.f32 %v3497_v46, 0.0 }
 0x1e5   : > { %3512 = vst [vmem:[%s163_s20 + $0x30] sm:$0xff] %v3504_v47  ;;  %v3503_v13 = vmax.f32 %v3495_v53, 0.0 }
 0x1e6   : > { %3510 = vst [vmem:[%s163_s20 + $0x20] sm:$0xff] %v3502_v54  ;;  %3513 = vst [vmem:[%s163_s20 + $0x38] sm:$0xff] %v3505_v12 }
 0x1e7   : > { %3511 = vst [vmem:[%s163_s20 + $0x28] sm:$0xff] %v3503_v13 }
 0x1e8   : > { %3849 = shalt.err (!%p3846_p3)
}
 0x1e9   : > { %s3850_s6 = scalar_lea.hbm %s4628_s28, 1024  ;;  %s3854_s9 = scalar_lea.hbm %s4675_s3, 2048 }
 0x1ea   : > { %p3851_p4 = scmp.ne.s32.totalorder %s4628_s28, %s3850_s6  ;;  %p3855_p9 = scmp.lt.u32.totalorder %s4628_s28, %s4675_s3 }
 0x1eb   : > { %p3856_p10 = scmp.lt.u32.totalorder %s3854_s9, %s3850_s6  ;;  %p3858_p12 = scmp.lt.u32.totalorder %s3850_s6, %s4628_s28 }
 0x1ec   : > { %p3852_p7 = pnand %p3851_p4, %p3969_p5 }
 0x1ed   : > { %p3857_p11 = por %p3856_p10, %p3855_p9 }
 0x1ee   : > { %p3853_p8 = pneg %p3852_p7 }
 0x1ef   : > { %p3859_p13 = por %p3858_p12, %p3857_p11 }
 0x1f1   : > { %p3860_p0 = pnand %p3859_p13, %p3853_p8 }
 0x1f3   : > { %3863 = shalt.err (!%p3860_p0)
}
 0x1f4   : > { %3782 = dma.vmem_to_hbm [thread:$0]  (%p3969_p5), %s4630_s25, 1024, %s4628_s28, %s3515_s16  }
 0x1f5 PF: > { %p3788_p1 = scmp.ge.s32.totalorder %s3898_s15, 2  ;;  %s3541_s17 = sand.u32 1, %s3886_s12  }
 0x1f6   : > { %s3542_s19 = scalar_lea.sflag [#allocation3], %s3541_s17 }
 0x1f7   : > { %p3785_p2 = pnand %p3788_p1, %p3973_p6 }
 0x1f9   : > { %3881 = dma.done.wait (!%p3785_p2), %s3542_s19, 1024  }
 0x1fa   : > { %3883 = vsyncadd (!%p3785_p2), %s3542_s19, 4294966272  ;;  %p13_p3 = scmp.ge.s32.totalorder %s3956_s18, 4   ;;  %s4784_s12 = smov %s3890_s13 }
 0x1fb   : > { %s4785_s13 = smov %s3894_s14  ;;  %s4786_s14 = smov %s3967_s21 }
 0x1fc   : > { %s4787_s15 = smov %s3956_s18  ;;  %15 = sbr.rel (!%p13_p3) target bundleno = 3 (0x3), region = 75 }
 0x203   :  { %3547 = vsyncpa [#allocation3], 1 }
 0x204   :  { %3549 = vsyncpa [#allocation3 + $0x1], 1 }

</bundles_post_ra>
